<compile_context>
chip_gen: v5e
topology: v5e:2x2
jax: 0.10.0
libtpu: 0.0.40
codegen_flags: <defaults>
</compile_context>

<pallas_src>
import functools
import numpy as np

import jax
import jax.numpy as jnp
from jax.experimental import pallas as pl
from jax.experimental.pallas import tpu as pltpu


# Tap order t = ky*3 + kx  (dy = ky-1, dx = kx-1) -- must match the weight layout.
_OFFSETS = tuple((dy, dx) for dy in (-1, 0, 1) for dx in (-1, 0, 1))


def _bilinear_matrix(out_size: int, in_size: int) -> np.ndarray:
    """Interpolation matrix matching F.interpolate(mode='bilinear', align_corners=True)."""
    A = np.zeros((out_size, in_size), dtype=np.float32)
    if out_size == 1 or in_size == 1:
        A[:, 0] = 1.0
        return A
    scale = (in_size - 1) / (out_size - 1)
    for i in range(out_size):
        src = i * scale
        i0 = min(int(np.floor(src)), in_size - 1)
        i1 = min(i0 + 1, in_size - 1)
        f = src - i0
        A[i, i0] += 1.0 - f
        A[i, i1] += f
    return A


def _roll_lanes(x, delta, n):
    """out[..., p] = x[..., (p + delta) % n], static delta (concat of lane slices)."""
    delta = delta % n
    if delta == 0:
        return x
    return jnp.concatenate([x[..., delta:], x[..., :delta]], axis=-1)


# ---------------------------------------------------------------------------
# Fused kernel: conv3x3 + GroupNorm + ReLU (+ optional separable bilinear x2)
# One grid step processes a tile of `Bt` images (static Python loop inside).
# ---------------------------------------------------------------------------
def _fused_kernel(H, W, Cin, Cout, groups, eps, Bt, upsample, *refs):
    if upsample:
        (x_ref, w_ref, m_ref, cg_ref, gc_ref, gamma_ref, beta_ref,
         awt_ref, aht_ref, o_ref) = refs
    else:
        (x_ref, w_ref, m_ref, cg_ref, gc_ref, gamma_ref, beta_ref, o_ref) = refs
        awt_ref = aht_ref = None

    HW = H * W
    gs = Cout // groups
    inv_n = 1.0 / float(HW * gs)

    w_t = w_ref[...]            # (Cout, 9*Cin)  bf16
    masks = m_ref[...]          # (9, HW)        bf16 (exact 0/1)
    gamma = gamma_ref[...]      # (Cout, 1)      f32
    beta = beta_ref[...]        # (Cout, 1)      f32
    if gs > 1:
        cg = cg_ref[...]        # (Cout, G) one-hot, f32
        gc = gc_ref[...]        # (G, Cout) one-hot, f32

    for b in range(Bt):                                     # static, Bt is small
        xb = x_ref[b]                                       # (Cin, HW) bf16

        # Shift+mask im2col: 9 lane-shifted, edge-masked copies stacked on the
        # contraction axis -> one well-filled K = 9*Cin matmul.
        taps = []
        for t, (dy, dx) in enumerate(_OFFSETS):
            if dy == 0 and dx == 0:
                taps.append(xb)
            else:
                shifted = _roll_lanes(xb, dy * W + dx, HW)
                taps.append(shifted * masks[t:t + 1, :])
        patches = jnp.concatenate(taps, axis=0)             # (9*Cin, HW) bf16

        acc = jnp.dot(w_t, patches,
                      preferred_element_type=jnp.float32)   # (Cout, HW) f32

        # GroupNorm(groups, Cout): two-pass centered variance, all in f32.
        sum_c = jnp.sum(acc, axis=1, keepdims=True)         # (Cout, 1)
        if gs == 1:
            mean_c = sum_c * inv_n
        else:
            mean_g = jnp.dot(gc, sum_c, preferred_element_type=jnp.float32) * inv_n
            mean_c = jnp.dot(cg, mean_g, preferred_element_type=jnp.float32)
        cent = acc - mean_c                                  # (Cout, HW)
        ssq_c = jnp.sum(cent * cent, axis=1, keepdims=True)  # (Cout, 1)
        if gs == 1:
            inv_c = jax.lax.rsqrt(ssq_c * inv_n + eps)
        else:
            var_g = jnp.dot(gc, ssq_c, preferred_element_type=jnp.float32) * inv_n
            inv_c = jnp.dot(cg, jax.lax.rsqrt(var_g + eps),
                            preferred_element_type=jnp.float32)
        y = jnp.maximum(cent * (inv_c * gamma) + beta, 0.0)  # (Cout, HW) f32

        if upsample:
            # Separable bilinear x2 (align_corners=True): W direction, then H.
            H2, W2 = 2 * H, 2 * W
            r1 = jnp.dot(y.reshape(Cout * H, W), awt_ref[...],
                         preferred_element_type=jnp.float32)          # (Cout*H, 2W)
            r1 = jnp.swapaxes(r1.reshape(Cout, H, W2), 1, 2)          # (Cout, 2W, H)
            r2 = jnp.dot(r1.reshape(Cout * W2, H), aht_ref[...],
                         preferred_element_type=jnp.float32)          # (Cout*2W, 2H)
            r2 = jnp.swapaxes(r2.reshape(Cout, W2, H2), 1, 2)         # (Cout, 2H, 2W)
            o_ref[b] = r2.reshape(Cout, H2 * W2).astype(o_ref.dtype)
        else:
            o_ref[b] = y.astype(o_ref.dtype)


# ---------------------------------------------------------------------------
# Wrapper: parameter packing, VMEM sizing, pallas_call
# ---------------------------------------------------------------------------
def _vmem_capacity_bytes():
    try:
        return int(pltpu.get_tpu_info().vmem_capacity_bytes)
    except Exception:
        return 64 * 2 ** 20      # conservative (v7x per-core VMEM)


def _pick_batch_tile(N, per_image_bytes, budget_bytes):
    cap = max(1, int(budget_bytes // max(per_image_bytes, 1)))
    if N >= 2:
        cap = min(cap, max(1, N // 2))   # keep >=2 grid steps (v7x: 2 TensorCores)
    cap = max(1, min(cap, N))
    for bt in range(cap, 0, -1):
        if N % bt == 0:
            return bt
    return 1


def conv3x3_gn_relu(x_nchw, weight, gamma, beta, *, upsample=False,
                    groups=32, eps=1e-5):
    N, Cin, H, W = x_nchw.shape
    Cout = weight.shape[0]
    assert weight.shape == (Cout, Cin, 3, 3)
    assert Cout % groups == 0
    HW = H * W
    out_hw = 4 * HW if upsample else HW
    out_dtype = x_nchw.dtype

    # NCHW -> (N, Cin, H*W): reshape only (no HBM transpose).  bf16 MXU operands.
    x_flat = x_nchw.reshape(N, Cin, HW).astype(jnp.bfloat16)
    # torch OIHW -> (Cout, 9*Cin), contraction index (ky*3 + kx)*Cin + ci.
    w_t = jnp.transpose(weight, (0, 2, 3, 1)).reshape(Cout, 9 * Cin).astype(jnp.bfloat16)

    # Boundary masks for the shift-based im2col (1 = tap lands inside the image).
    py, px = np.divmod(np.arange(HW), W)
    masks_np = np.stack(
        [((py + dy >= 0) & (py + dy < H) & (px + dx >= 0) & (px + dx < W))
         for dy, dx in _OFFSETS]).astype(np.float32)
    masks = jnp.asarray(masks_np, dtype=jnp.bfloat16)                  # (9, HW)

    # GroupNorm channel<->group one-hot matrices (only used when gs > 1).
    gs = Cout // groups
    cg_np = (np.arange(Cout)[:, None] // gs
             == np.arange(groups)[None, :]).astype(np.float32)
    cg = jnp.asarray(cg_np)                                            # (Cout, G)
    gc = jnp.asarray(np.ascontiguousarray(cg_np.T))                    # (G, Cout)
    gamma_col = gamma.reshape(Cout, 1).astype(jnp.float32)
    beta_col = beta.reshape(Cout, 1).astype(jnp.float32)

    inputs = [x_flat, w_t, masks, cg, gc, gamma_col, beta_col]
    const_specs = [
        pl.BlockSpec((Cout, 9 * Cin), lambda n: (0, 0)),
        pl.BlockSpec((9, HW), lambda n: (0, 0)),
        pl.BlockSpec((Cout, groups), lambda n: (0, 0)),
        pl.BlockSpec((groups, Cout), lambda n: (0, 0)),
        pl.BlockSpec((Cout, 1), lambda n: (0, 0)),
        pl.BlockSpec((Cout, 1), lambda n: (0, 0)),
    ]
    if upsample:
        awt = jnp.asarray(_bilinear_matrix(2 * W, W).T)                # (W, 2W) f32
        aht = jnp.asarray(_bilinear_matrix(2 * H, H).T)                # (H, 2H) f32
        inputs += [awt, aht]
        const_specs += [pl.BlockSpec((W, 2 * W), lambda n: (0, 0)),
                        pl.BlockSpec((H, 2 * H), lambda n: (0, 0))]

    # ---- generation-aware VMEM budget and batch-tile selection ----
    vmem_cap = _vmem_capacity_bytes()
    const_bytes = (9 * Cin * Cout * 2 + 9 * HW * 2 + 2 * Cout * groups * 4
                   + 2 * Cout * 4
                   + ((2 * W * W + 2 * H * H) * 2 * 4 if upsample else 0))
    temp_bytes = (2 * 9 * Cin * HW * 2            # im2col patches + shift temporaries
                  + 6 * Cout * HW * 4             # acc / centered / y / products (f32)
                  + (4 * Cout * out_hw * 4 if upsample else 0))
    per_image = 2 * Cin * HW * 2 + 2 * Cout * out_hw * 4 + temp_bytes
    bt = _pick_batch_tile(N, per_image, max(vmem_cap // 4, 4 * 2 ** 20))

    est = (2 * bt * Cin * HW * 2 + 2 * bt * Cout * out_hw * 4
           + 2 * const_bytes + temp_bytes)
    vmem_limit = int(min(int(0.85 * vmem_cap),
                         max(2 * est, min(16 * 2 ** 20, vmem_cap // 4))))

    in_specs = [pl.BlockSpec((bt, Cin, HW), lambda n: (n, 0, 0))] + const_specs
    out_spec = pl.BlockSpec((bt, Cout, out_hw), lambda n: (n, 0, 0))

    kernel = functools.partial(_fused_kernel, H, W, Cin, Cout, groups,
                               float(eps), bt, upsample)
    y = pl.pallas_call(
        kernel,
        out_shape=jax.ShapeDtypeStruct((N, Cout, out_hw), out_dtype),
        grid_spec=pltpu.PrefetchScalarGridSpec(
            num_scalar_prefetch=0,
            grid=(N // bt,),
            in_specs=in_specs,
            out_specs=out_spec,
        ),
        compiler_params=pltpu.CompilerParams(
            dimension_semantics=("parallel",),
            vmem_limit_bytes=vmem_limit,
        ),
    )(*inputs)

    Ho, Wo = (2 * H, 2 * W) if upsample else (H, W)
    return y.reshape(N, Cout, Ho, Wo)        # already channels-first: reshape only


# ---------------------------------------------------------------------------
# Pure-JAX reference (sanity check)
# ---------------------------------------------------------------------------
def _reference(x, weight, gamma, beta, *, upsample, groups=32, eps=1e-5):
    y = jax.lax.conv_general_dilated(
        x, weight, window_strides=(1, 1), padding=((1, 1), (1, 1)),
        dimension_numbers=("NCHW", "OIHW", "NCHW"),
        precision=jax.lax.Precision.HIGHEST)
    N, C, H, W = y.shape
    yg = y.reshape(N, groups, C // groups, H, W)
    mean = yg.mean(axis=(2, 3, 4), keepdims=True)
    var = ((yg - mean) ** 2).mean(axis=(2, 3, 4), keepdims=True)
    yn = ((yg - mean) * jax.lax.rsqrt(var + eps)).reshape(N, C, H, W)
    y = jnp.maximum(yn * gamma.reshape(1, C, 1, 1) + beta.reshape(1, C, 1, 1), 0.0)
    if upsample:
        Ah = jnp.asarray(_bilinear_matrix(2 * H, H))
        Aw = jnp.asarray(_bilinear_matrix(2 * W, W))
        y = jnp.einsum("uh,nchw,vw->ncuv", Ah, y, Aw,
                       precision=jax.lax.Precision.HIGHEST)
    return y


if __name__ == "__main__":
    key = jax.random.PRNGKey(0)
    k1, k2, k3, k4 = jax.random.split(key, 4)

    # PyTorch-style NCHW input; GroupNorm(32, Cout) requires Cout % 32 == 0.
    N, Cin, H, W = 2, 16, 16, 16
    Cout = 32

    x = jax.random.normal(k1, (N, Cin, H, W), dtype=jnp.float32)
    weight = 0.1 * jax.random.normal(k2, (Cout, Cin, 3, 3), dtype=jnp.float32)
    gamma = 1.0 + 0.1 * jax.random.normal(k3, (Cout,), dtype=jnp.float32)
    beta = 0.1 * jax.random.normal(k4, (Cout,), dtype=jnp.float32)

    # upsample=False path (module default)
    y0 = conv3x3_gn_relu(x, weight, gamma, beta, upsample=False)
    jax.block_until_ready(y0)
    assert y0.shape == (N, Cout, H, W)

    # upsample=True path (bilinear x2, align_corners=True), fused into the kernel
    y1 = conv3x3_gn_relu(x, weight, gamma, beta, upsample=True)
    jax.block_until_ready(y1)
    assert y1.shape == (N, Cout, 2 * H, 2 * W)

    # Loose numeric sanity check (conv operands are bf16 on the MXU).
    r0 = _reference(x, weight, gamma, beta, upsample=False)
    r1 = _reference(x, weight, gamma, beta, upsample=True)
    e0 = float(jnp.max(jnp.abs(y0 - r0)) / (jnp.max(jnp.abs(r0)) + 1e-6))
    e1 = float(jnp.max(jnp.abs(y1 - r1)) / (jnp.max(jnp.abs(r1)) + 1e-6))
    assert e0 < 5e-2 and e1 < 5e-2, (e0, e1)

    print("KERNEL_OK")
</pallas_src>

<mosaic_0001>
module attributes {stable_mosaic.version = 11 : i64} {
  func.func @_fused_kernel(%arg0: i32, %arg1: memref<1x16x256xbf16, #tpu.memory_space<vmem>>, %arg2: memref<32x144xbf16, #tpu.memory_space<vmem>>, %arg3: memref<9x256xbf16, #tpu.memory_space<vmem>>, %arg4: memref<32x32xf32, #tpu.memory_space<vmem>>, %arg5: memref<32x32xf32, #tpu.memory_space<vmem>>, %arg6: memref<32x1xf32, #tpu.memory_space<vmem>>, %arg7: memref<32x1xf32, #tpu.memory_space<vmem>>, %arg8: memref<1x32x256xf32, #tpu.memory_space<vmem>>) attributes {dimension_semantics = [#tpu.dimension_semantics<parallel>], iteration_bounds = array<i64: 2>, scalar_prefetch = 0 : i64, scratch_operands = 0 : i64, tpu.core_type = #tpu.core_type<tc>, window_params = [{transform_indices = @transform_0, window_bounds = array<i64: 1, 16, 256>}, {pipeline_mode = #tpu.pipeline_mode<synchronous>, transform_indices = @transform_1, window_bounds = array<i64: 32, 144>}, {pipeline_mode = #tpu.pipeline_mode<synchronous>, transform_indices = @transform_2, window_bounds = array<i64: 9, 256>}, {pipeline_mode = #tpu.pipeline_mode<synchronous>, transform_indices = @transform_3, window_bounds = array<i64: 32, 32>}, {pipeline_mode = #tpu.pipeline_mode<synchronous>, transform_indices = @transform_4, window_bounds = array<i64: 32, 32>}, {pipeline_mode = #tpu.pipeline_mode<synchronous>, transform_indices = @transform_5, window_bounds = array<i64: 32, 1>}, {pipeline_mode = #tpu.pipeline_mode<synchronous>, transform_indices = @transform_6, window_bounds = array<i64: 32, 1>}, {transform_indices = @transform_7, window_bounds = array<i64: 1, 32, 256>}]} {
    %c0 = arith.constant 0 : index
    %c0_0 = arith.constant 0 : index
    %0 = vector.load %arg2[%c0, %c0_0] : memref<32x144xbf16, #tpu.memory_space<vmem>>, vector<32x144xbf16>
    %c0_1 = arith.constant 0 : index
    %c0_2 = arith.constant 0 : index
    %1 = vector.load %arg3[%c0_1, %c0_2] : memref<9x256xbf16, #tpu.memory_space<vmem>>, vector<9x256xbf16>
    %c0_3 = arith.constant 0 : index
    %c0_4 = arith.constant 0 : index
    %2 = vector.load %arg6[%c0_3, %c0_4] : memref<32x1xf32, #tpu.memory_space<vmem>>, vector<32x1xf32>
    %c0_5 = arith.constant 0 : index
    %c0_6 = arith.constant 0 : index
    %3 = vector.load %arg7[%c0_5, %c0_6] : memref<32x1xf32, #tpu.memory_space<vmem>>, vector<32x1xf32>
    %c0_7 = arith.constant 0 : index
    %c0_8 = arith.constant 0 : index
    %c0_9 = arith.constant 0 : index
    %4 = vector.load %arg1[%c0_7, %c0_8, %c0_9] : memref<1x16x256xbf16, #tpu.memory_space<vmem>>, vector<1x16x256xbf16>
    %5 = vector.shape_cast %4 : vector<1x16x256xbf16> to vector<16x256xbf16>
    %6 = vector.extract_strided_slice %5 {offsets = [0, 239], sizes = [16, 17], strides = [1, 1]} : vector<16x256xbf16> to vector<16x17xbf16>
    %7 = vector.extract_strided_slice %5 {offsets = [0, 0], sizes = [16, 239], strides = [1, 1]} : vector<16x256xbf16> to vector<16x239xbf16>
    %8 = tpu.concatenate %6, %7 in 1 : vector<16x17xbf16>, vector<16x239xbf16> -> vector<16x256xbf16>
    %9 = vector.extract_strided_slice %1 {offsets = [0, 0], sizes = [1, 256], strides = [1, 1]} : vector<9x256xbf16> to vector<1x256xbf16>
    %10 = vector.broadcast %9 : vector<1x256xbf16> to vector<16x256xbf16>
    %11 = arith.mulf %8, %10 : vector<16x256xbf16>
    %12 = vector.extract_strided_slice %5 {offsets = [0, 240], sizes = [16, 16], strides = [1, 1]} : vector<16x256xbf16> to vector<16x16xbf16>
    %13 = vector.extract_strided_slice %5 {offsets = [0, 0], sizes = [16, 240], strides = [1, 1]} : vector<16x256xbf16> to vector<16x240xbf16>
    %14 = tpu.concatenate %12, %13 in 1 : vector<16x16xbf16>, vector<16x240xbf16> -> vector<16x256xbf16>
    %15 = vector.extract_strided_slice %1 {offsets = [1, 0], sizes = [1, 256], strides = [1, 1]} : vector<9x256xbf16> to vector<1x256xbf16>
    %16 = vector.broadcast %15 : vector<1x256xbf16> to vector<16x256xbf16>
    %17 = arith.mulf %14, %16 : vector<16x256xbf16>
    %18 = vector.extract_strided_slice %5 {offsets = [0, 241], sizes = [16, 15], strides = [1, 1]} : vector<16x256xbf16> to vector<16x15xbf16>
    %19 = vector.extract_strided_slice %5 {offsets = [0, 0], sizes = [16, 241], strides = [1, 1]} : vector<16x256xbf16> to vector<16x241xbf16>
    %20 = tpu.concatenate %18, %19 in 1 : vector<16x15xbf16>, vector<16x241xbf16> -> vector<16x256xbf16>
    %21 = vector.extract_strided_slice %1 {offsets = [2, 0], sizes = [1, 256], strides = [1, 1]} : vector<9x256xbf16> to vector<1x256xbf16>
    %22 = vector.broadcast %21 : vector<1x256xbf16> to vector<16x256xbf16>
    %23 = arith.mulf %20, %22 : vector<16x256xbf16>
    %24 = vector.extract_strided_slice %5 {offsets = [0, 255], sizes = [16, 1], strides = [1, 1]} : vector<16x256xbf16> to vector<16x1xbf16>
    %25 = vector.extract_strided_slice %5 {offsets = [0, 0], sizes = [16, 255], strides = [1, 1]} : vector<16x256xbf16> to vector<16x255xbf16>
    %26 = tpu.concatenate %24, %25 in 1 : vector<16x1xbf16>, vector<16x255xbf16> -> vector<16x256xbf16>
    %27 = vector.extract_strided_slice %1 {offsets = [3, 0], sizes = [1, 256], strides = [1, 1]} : vector<9x256xbf16> to vector<1x256xbf16>
    %28 = vector.broadcast %27 : vector<1x256xbf16> to vector<16x256xbf16>
    %29 = arith.mulf %26, %28 : vector<16x256xbf16>
    %30 = vector.extract_strided_slice %5 {offsets = [0, 1], sizes = [16, 255], strides = [1, 1]} : vector<16x256xbf16> to vector<16x255xbf16>
    %31 = vector.extract_strided_slice %5 {offsets = [0, 0], sizes = [16, 1], strides = [1, 1]} : vector<16x256xbf16> to vector<16x1xbf16>
    %32 = tpu.concatenate %30, %31 in 1 : vector<16x255xbf16>, vector<16x1xbf16> -> vector<16x256xbf16>
    %33 = vector.extract_strided_slice %1 {offsets = [5, 0], sizes = [1, 256], strides = [1, 1]} : vector<9x256xbf16> to vector<1x256xbf16>
    %34 = vector.broadcast %33 : vector<1x256xbf16> to vector<16x256xbf16>
    %35 = arith.mulf %32, %34 : vector<16x256xbf16>
    %36 = vector.extract_strided_slice %5 {offsets = [0, 15], sizes = [16, 241], strides = [1, 1]} : vector<16x256xbf16> to vector<16x241xbf16>
    %37 = vector.extract_strided_slice %5 {offsets = [0, 0], sizes = [16, 15], strides = [1, 1]} : vector<16x256xbf16> to vector<16x15xbf16>
    %38 = tpu.concatenate %36, %37 in 1 : vector<16x241xbf16>, vector<16x15xbf16> -> vector<16x256xbf16>
    %39 = vector.extract_strided_slice %1 {offsets = [6, 0], sizes = [1, 256], strides = [1, 1]} : vector<9x256xbf16> to vector<1x256xbf16>
    %40 = vector.broadcast %39 : vector<1x256xbf16> to vector<16x256xbf16>
    %41 = arith.mulf %38, %40 : vector<16x256xbf16>
    %42 = vector.extract_strided_slice %5 {offsets = [0, 16], sizes = [16, 240], strides = [1, 1]} : vector<16x256xbf16> to vector<16x240xbf16>
    %43 = vector.extract_strided_slice %5 {offsets = [0, 0], sizes = [16, 16], strides = [1, 1]} : vector<16x256xbf16> to vector<16x16xbf16>
    %44 = tpu.concatenate %42, %43 in 1 : vector<16x240xbf16>, vector<16x16xbf16> -> vector<16x256xbf16>
    %45 = vector.extract_strided_slice %1 {offsets = [7, 0], sizes = [1, 256], strides = [1, 1]} : vector<9x256xbf16> to vector<1x256xbf16>
    %46 = vector.broadcast %45 : vector<1x256xbf16> to vector<16x256xbf16>
    %47 = arith.mulf %44, %46 : vector<16x256xbf16>
    %48 = vector.extract_strided_slice %5 {offsets = [0, 17], sizes = [16, 239], strides = [1, 1]} : vector<16x256xbf16> to vector<16x239xbf16>
    %49 = vector.extract_strided_slice %5 {offsets = [0, 0], sizes = [16, 17], strides = [1, 1]} : vector<16x256xbf16> to vector<16x17xbf16>
    %50 = tpu.concatenate %48, %49 in 1 : vector<16x239xbf16>, vector<16x17xbf16> -> vector<16x256xbf16>
    %51 = vector.extract_strided_slice %1 {offsets = [8, 0], sizes = [1, 256], strides = [1, 1]} : vector<9x256xbf16> to vector<1x256xbf16>
    %52 = vector.broadcast %51 : vector<1x256xbf16> to vector<16x256xbf16>
    %53 = arith.mulf %50, %52 : vector<16x256xbf16>
    %54 = tpu.concatenate %11, %17, %23, %29, %5, %35, %41, %47, %53 in 0 : vector<16x256xbf16>, vector<16x256xbf16>, vector<16x256xbf16>, vector<16x256xbf16>, vector<16x256xbf16>, vector<16x256xbf16>, vector<16x256xbf16>, vector<16x256xbf16>, vector<16x256xbf16> -> vector<144x256xbf16>
    %cst = arith.constant dense<0.000000e+00> : vector<32x256xf32>
    %55 = tpu.matmul %0, %54, %cst {dimension_numbers = #tpu.dot_dimension_numbers<[1], [0], [0], [1], [0, 0, 1, 1], [], []>} : vector<32x144xbf16>, vector<144x256xbf16>, vector<32x256xf32> -> vector<32x256xf32>
    %cst_10 = arith.constant dense<0.000000e+00> : vector<32xf32>
    %56 = vector.multi_reduction <add>, %55, %cst_10 [1] : vector<32x256xf32> to vector<32xf32>
    %57 = vector.shape_cast %56 : vector<32xf32> to vector<32x1xf32>
    %cst_11 = arith.constant 3.906250e-03 : f32
    %58 = vector.broadcast %cst_11 : f32 to vector<32x1xf32>
    %59 = arith.mulf %57, %58 : vector<32x1xf32>
    %60 = vector.broadcast %59 : vector<32x1xf32> to vector<32x256xf32>
    %61 = arith.subf %55, %60 : vector<32x256xf32>
    %62 = arith.mulf %61, %61 : vector<32x256xf32>
    %cst_12 = arith.constant dense<0.000000e+00> : vector<32xf32>
    %63 = vector.multi_reduction <add>, %62, %cst_12 [1] : vector<32x256xf32> to vector<32xf32>
    %64 = vector.shape_cast %63 : vector<32xf32> to vector<32x1xf32>
    %cst_13 = arith.constant 3.906250e-03 : f32
    %65 = vector.broadcast %cst_13 : f32 to vector<32x1xf32>
    %66 = arith.mulf %64, %65 : vector<32x1xf32>
    %cst_14 = arith.constant 9.99999974E-6 : f32
    %67 = vector.broadcast %cst_14 : f32 to vector<32x1xf32>
    %68 = arith.addf %66, %67 : vector<32x1xf32>
    %69 = math.rsqrt %68 : vector<32x1xf32>
    %70 = arith.mulf %69, %2 : vector<32x1xf32>
    %71 = vector.broadcast %70 : vector<32x1xf32> to vector<32x256xf32>
    %72 = arith.mulf %61, %71 : vector<32x256xf32>
    %73 = vector.broadcast %3 : vector<32x1xf32> to vector<32x256xf32>
    %74 = arith.addf %72, %73 : vector<32x256xf32>
    %cst_15 = arith.constant 0.000000e+00 : f32
    %75 = vector.broadcast %cst_15 : f32 to vector<32x256xf32>
    %76 = arith.maximumf %74, %75 : vector<32x256xf32>
    %c0_16 = arith.constant 0 : index
    %c0_17 = arith.constant 0 : index
    %c0_18 = arith.constant 0 : index
    %77 = vector.load %arg8[%c0_16, %c0_17, %c0_18] : memref<1x32x256xf32, #tpu.memory_space<vmem>>, vector<1x32x256xf32>
    %78 = vector.shape_cast %77 : vector<1x32x256xf32> to vector<32x256xf32>
    %79 = vector.shape_cast %76 : vector<32x256xf32> to vector<1x32x256xf32>
    tpu.vector_store %arg8[%c0_16, %c0_17, %c0_18], %79 {strides = array<i32>} : memref<1x32x256xf32, #tpu.memory_space<vmem>>, vector<1x32x256xf32>,
    return
  }
  func.func @transform_0(%arg0: i32) -> (i32, i32, i32) {
    %c0_i32 = arith.constant 0 : i32
    %c0_i32_0 = arith.constant 0 : i32
    %c0_i32_1 = arith.constant 0 : i32
    return %arg0, %c0_i32, %c0_i32_0 : i32, i32, i32
  }
  func.func @transform_1(%arg0: i32) -> (i32, i32) {
    %c0_i32 = arith.constant 0 : i32
    %c0_i32_0 = arith.constant 0 : i32
    %c0_i32_1 = arith.constant 0 : i32
    return %c0_i32, %c0_i32_0 : i32, i32
  }
  func.func @transform_2(%arg0: i32) -> (i32, i32) {
    %c0_i32 = arith.constant 0 : i32
    %c0_i32_0 = arith.constant 0 : i32
    %c0_i32_1 = arith.constant 0 : i32
    return %c0_i32, %c0_i32_0 : i32, i32
  }
  func.func @transform_3(%arg0: i32) -> (i32, i32) {
    %c0_i32 = arith.constant 0 : i32
    %c0_i32_0 = arith.constant 0 : i32
    %c0_i32_1 = arith.constant 0 : i32
    return %c0_i32, %c0_i32_0 : i32, i32
  }
  func.func @transform_4(%arg0: i32) -> (i32, i32) {
    %c0_i32 = arith.constant 0 : i32
    %c0_i32_0 = arith.constant 0 : i32
    %c0_i32_1 = arith.constant 0 : i32
    return %c0_i32, %c0_i32_0 : i32, i32
  }
  func.func @transform_5(%arg0: i32) -> (i32, i32) {
    %c0_i32 = arith.constant 0 : i32
    %c0_i32_0 = arith.constant 0 : i32
    %c0_i32_1 = arith.constant 0 : i32
    return %c0_i32, %c0_i32_0 : i32, i32
  }
  func.func @transform_6(%arg0: i32) -> (i32, i32) {
    %c0_i32 = arith.constant 0 : i32
    %c0_i32_0 = arith.constant 0 : i32
    %c0_i32_1 = arith.constant 0 : i32
    return %c0_i32, %c0_i32_0 : i32, i32
  }
  func.func @transform_7(%arg0: i32) -> (i32, i32, i32) {
    %c0_i32 = arith.constant 0 : i32
    %c0_i32_0 = arith.constant 0 : i32
    %c0_i32_1 = arith.constant 0 : i32
    return %arg0, %c0_i32, %c0_i32_0 : i32, i32, i32
  }
}

</mosaic_0001>

<bundles_post_ra>
// kernel: tpu_custom_call.1
= control target key start
LH: loop header
LB: loop body
LE: loop exit
PB: predicated region body
PF: predicated region fallthrough
CT: control target
= control target key end

     0   :  { %s1712_s0 = inlined_call_operand.vmem [shape: bf16[2,16,256], index: 0, kind: input, shape index: {}]   ;;  %s1713_s1 = inlined_call_operand.vmem [shape: bf16[32,144], index: 1, kind: input, shape index: {}]   ;;  %s1714_s2 = inlined_call_operand.hbm [shape: bf16[9,256], index: 2, kind: input, shape index: {}]   ;;  %s1715_s3 = inlined_call_operand.hbm [shape: f32[32,32], index: 3, kind: input, shape index: {}]   ;;  %s1716_s4 = inlined_call_operand.hbm [shape: f32[32,32], index: 4, kind: input, shape index: {}]   ;;  %s1717_s5 = inlined_call_operand.vmem [shape: f32[32,1], index: 5, kind: input, shape index: {}]   ;;  %s1718_s6 = inlined_call_operand.vmem [shape: f32[32,1], index: 6, kind: input, shape index: {}]   ;;  %s1719_s7 = inlined_call_operand.hbm [shape: f32[2,32,256], index: 7, kind: output, shape index: {}]  }
   0x1   :  { %1720 = sst [smem:[#allocation12_spill]] %s1714_s2 }
   0x2   :  { %12 = vsyncpa [#allocation3], 0 }
   0x3   :  { %13 = vsyncpa [#allocation6], 0 }
   0x4   :  { %14 = vsyncpa [#allocation4], 0 }
   0x5   :  { %16 = vsyncpa [#allocation4 + $0x1], 0  ;;  %s1411_s24 = smov 0   ;;  %s1413_s25 = smov 0  }
   0x6   :  { %s1415_s26 = smov 0   ;;  %s1417_s27 = smov 0  }
   0x7 LB: > { %s1432_s28 = sadd.s32 4294967295, %s1354_s27   ;;  %s1047_s29 = sadd.s32 4294967294, %s1354_s27   ;;  %s1354_s27 = sphi %s1417_s27, %s1729_s27   ;;  %s1350_s26 = sphi %s1415_s26, %s1728_s26   ;;  %s1346_s25 = sphi %s1413_s25, %s1727_s25   ;;  %s1342_s24 = sphi %s1411_s24, %s1726_s24  }
   0x8   : > { %s1436_s30 = sadd.s32 1, %s1354_s27   ;;  %s181_s8 = sadd.s32 1, %s1350_s26 }
   0x9   : > { %s178_s9 = ssub.s32 %s1354_s27, %s1436_s30  ;;  %p191_p0 = scmp.ne.s32.totalorder %s1350_s26, %s1346_s25 }
   0xa   : > { %p179_p1 = scmp.eq.s32.totalorder %s178_s9, 0  ;;  %p192_p2 = scmp.eq.s32.totalorder %s1432_s28, 1 }
   0xb   : > { %p197_p3 = scmp.ne.s32.totalorder %s1346_s25, %s1342_s24  ;;  %p198_p4 = scmp.eq.s32.totalorder %s1047_s29, 1 }
   0xc   : > { %s1447_s10 = scalar_select %p179_p1, %s1350_s26, %s181_s8  }
   0xd   : > { %p1449_p5 = por %p192_p2, %p191_p0  ;;  %p1453_p6 = por %p198_p4, %p197_p3 }
   0xe   : > { %p1048_p7 = scmp.ge.s32.totalorder %s1354_s27, 1  ;;  %p205_p8 = scmp.lt.s32.totalorder %s1354_s27, 3 }
   0xf   : > { %p1129_p9 = scmp.eq.s32.totalorder %s1432_s28, 0  ;;  %s233_s16 = sshll.u32 %s1715_s3, 4  ;;  %s234_s16 = int_to_ptr.hbm [resolvable:$true] %s233_s16 }
  0x10   : > { %p1460_p10 = pnand %p1048_p7, %p205_p8  ;;  %s1724_s2 = sld [smem:[#allocation12_spill]] }
  0x11   : > { %s1356_s21 = smov [#allocation5]   ;;  %s1357_s23 = smov 128  }
  0x12   : > { %p1115_p11 = pneg %p1460_p10  ;;  %s235_s22 = sshll.u32 %s1356_s21, 4  ;;  %s236_s22 = int_to_ptr.vmem [resolvable:$true] %s235_s22 }
  0x13   : > { %s1358_s29 = smov 8   ;;  %s1359_s8 = smov [#allocation2]  }
  0x14   : > { %p1474_p12 = pnand %p1129_p9, %p1115_p11  ;;  %s221_s9 = sshll.u32 %s1359_s8, 4  ;;  %s222_s9 = int_to_ptr.vmem [resolvable:$true] %s221_s9 }
  0x15   : > { %s247_s17 = sshll.u32 %s1716_s4, 4  ;;  %s1360_s18 = smov [#allocation7]   ;;  %s248_s17 = int_to_ptr.hbm [resolvable:$true] %s247_s17 }
  0x16   : > { %s219_s19 = sshll.u32 %s1724_s2, 4  ;;  %s249_s2 = sshll.u32 %s1360_s18, 4  ;;  %s220_s19 = int_to_ptr.hbm [resolvable:$true] %s219_s19  ;;  %s250_s2 = int_to_ptr.vmem [resolvable:$true] %s249_s2 }
  0x17   : > { %1121 = dma.hbm_to_vmem [thread:$0]  (!%p1474_p12), %s234_s16, 512, %s236_s22, [#allocation6], %s1357_s23, %s1357_s23, %s1358_s29  }
  0x18   : > { %1118 = dma.hbm_to_vmem [thread:$0]  (!%p1474_p12), %s220_s19, 256, %s222_s9, [#allocation3], %s1357_s23, %s1357_s23, %s1358_s29  }
  0x19   : > { %1124 = dma.hbm_to_vmem [thread:$0]  (!%p1474_p12), %s248_s17, 512, %s250_s2, [#allocation6], %s1357_s23, %s1357_s23, %s1358_s29  }
  0x1a   : > { %279 = sbr.rel (%p1460_p10) target bundleno = 760 (0x2f8), region = 48 }
  0x1f   : > { %1329 = dma.done.wait (%p1129_p9), [#allocation3], 256  }
  0x20   : > { %1331 = vsyncadd (%p1129_p9), [#allocation3], 4294967040 }
  0x21   : > { %1333 = dma.done.wait (%p1129_p9), [#allocation6], 1024  }
  0x22   : > { %1335 = vsyncadd (%p1129_p9), [#allocation6], 4294966272  ;;  %p322_p13 = scmp.lt.s32.totalorder %s1432_s28, 1  ;;  %s1361_s21 = smov 113   ;;  %v332_v6 = vld [vmem:[#allocation2] sm:$0xff]  ;;  %vm477_vm0 = vcmask 1039360  }
  0x23   : > { %s1362_s22 = smov 112   ;;  %s1363_s23 = smov 127   ;;  %v365_v7 = vunpack.c.l.b16 %v332_v6  ;;  %v366_v8 = vunpack.c.h.b16 %v332_v6  ;;  %vm503_vm1 = vcmask 924672   ;;  %vm529_vm2 = vcmask 916480  }
  0x24   : > { %s323_s16 = scalar_select %p322_p13, %s1432_s28, 1  ;;  %vm451_vm3 = vcmask 7168   ;;  %vm425_vm4 = vcmask 121856   ;;  %vm393_vm5 = vcmask 130048   ;;  %vm356_vm6 = vcmask 138240  }
  0x25   : > { %s1364_s29 = smov 1   ;;  %s1365_s8 = smov 15   ;;  %v367_v9 = vpack.c.b16 %v365_v7, %v365_v7  ;;  %v368_v10 = vpack.c.b16 %v366_v8, %v366_v8  ;;  %vm555_vm7 = vcmask 908288  }
  0x26   : > { %s1093_s2 = sshll.u32 %s323_s16, 4  ;;  %s1366_s9 = smov 16  }
  0x27   : > { %s326_s20 = scalar_lea.vmem %s1712_s0, %s1093_s2  ;;  %s1367_s14 = smov 17   ;;  %v401_v12 = vshrl.u32 %v367_v9, 16  ;;  %v405_v13 = vshrl.u32 %v368_v10, 16  ;;  %v1530_v27 = vpack.i.b16 %v367_v9, %v367_v9  ;;  %v1532_v28 = vpack.i.b16 %v368_v10, %v368_v10 }
  0x28   : > { %v1066_v0 = vld [vmem:[%s326_s20] sm:$0xf]  ;;  %v1099_v1 = vld [vmem:[%s326_s20 + $0x4] sm:$0xf0]  ;;  %v1098_v3 = vld [vmem:[%s326_s20 + $0x4] sm:$0xf] }
  0x29   : > { %v1502_v2 = vor.u32 %v1099_v1, %v1066_v0  ;;  %v1060_v4 = vld [vmem:[%s326_s20 + $0x8] sm:$0xf0]  ;;  %s1368_s15 = smov 111   ;;  %v1524_v14 = vpack.i.b16 %v401_v12, %v401_v12  ;;  %v1526_v15 = vpack.i.b16 %v405_v13, %v405_v13  ;;  %v511_v35 = vperm.slane %v1530_v27, 3  ;;  %s319_s19 = sand.u32 1, %s1346_s25  }
  0x2a   : > { %v1507_v5 = vor.u32 %v1098_v3, %v1060_v4  ;;  %v512_v36 = vperm.slane %v1532_v28, 3  ;;  %v433_v49 = vperm.slane %v1530_v27, 1  ;;  %v434_v50 = vperm.slane %v1532_v28, 1  ;;  %v333_v12 = vld [vmem:[#allocation2 + $0x8] sm:$0x11]  ;;  %s1057_s13 = sshll.u32 %s319_s19, 6 }
  0x2b   : > { %499 = vrot.lane.b32.xlu1 %v1502_v2, %s1361_s21  ;;  %525 = vrot.lane.b32.xlu0 %v1502_v2, %s1362_s22  ;;  %v485_v17 = vperm.slane %v1524_v14, 2  ;;  %v486_v18 = vperm.slane %v1526_v15, 2  ;;  %v537_v37 = vperm.slane %v1524_v14, 3  ;;  %v538_v38 = vperm.slane %v1526_v15, 3  ;;  %s1661_s20 = scalar_lea.vmem [#allocation8], %s1057_s13  ;;  %s1304_s2 = scalar_lea.hbm %s1719_s7, 128 }
  0x2c   : > { %473 = vrot.lane.b32.xlu2 %v1502_v2, %s1363_s23  ;;  %v459_v39 = vperm.slane %v1524_v14, 1  ;;  %v460_v40 = vperm.slane %v1526_v15, 1  ;;  %v517_v43 = vunpack.c.l.bf16 %v511_v35  ;;  %v518_v44 = vunpack.c.l.bf16 %v512_v36 }
  0x2d   : > { %v491_v21 = vunpack.c.l.bf16 %v485_v17  ;;  %v492_v22 = vunpack.c.l.bf16 %v486_v18  ;;  %v543_v45 = vunpack.c.l.bf16 %v537_v37  ;;  %v544_v46 = vunpack.c.l.bf16 %v538_v38 }
  0x2e   : > { %v465_v47 = vunpack.c.l.bf16 %v459_v39  ;;  %v466_v48 = vunpack.c.l.bf16 %v460_v40 }
  0x33   : > { %501 = vrot.lane.b32.xlu1 %v1507_v5, %s1361_s21  ;;  %527 = vrot.lane.b32.xlu0 %v1507_v5, %s1362_s22  ;;  %s1100_s21 = sshll.u32 %s1432_s28, 6  ;;  %s939_s28 = scalar_lea.sflag [#allocation4], %s319_s19 }
  0x34   : > { %475 = vrot.lane.b32.xlu2 %v1507_v5, %s1363_s23 }
  0x3b   : > { %449 = vrot.lane.b32.xlu1 %v1502_v2, %s1364_s29  ;;  %447 = vrot.lane.b32.xlu0 %v1507_v5, %s1364_s29  ;;  %s950_s29 = scalar_lea.hbm %s1719_s7, %s1100_s21 }
  0x3c   : > { %421 = vrot.lane.b32.xlu2 %v1507_v5, %s1365_s8 }
  0x43   : > { %389 = vrot.lane.b32.xlu1 %v1507_v5, %s1366_s9  ;;  %423 = vrot.lane.b32.xlu0 %v1502_v2, %s1365_s8  ;;  %s951_s8 = sshll.u32 %s1661_s20, 4  ;;  %s952_s8 = int_to_ptr.vmem [resolvable:$true] %s951_s8 }
  0x44   : > { %391 = vrot.lane.b32.xlu2 %v1502_v2, %s1366_s9 }
  0x4b   : > { %354 = vrot.lane.b32.xlu1 %v1502_v2, %s1367_s14  ;;  %349 = vrot.lane.b32.xlu0 %v1507_v5, %s1367_s14  ;;  %s953_s14 = sshll.u32 %s950_s29, 4  ;;  %s954_s14 = int_to_ptr.hbm [resolvable:$true] %s953_s14 }
  0x4c   : > { %551 = vrot.lane.b32.xlu2 %v1502_v2, %s1368_s15 }
  0x53   : > { %553 = vrot.lane.b32.xlu0 %v1507_v5, %s1368_s15  ;;  %s1298_s15 = sshra.s32 %s954_s14, 4  ;;  %s1299_s15 = int_to_ptr.hbm [resolvable:$true] %s1298_s15 }
  0x54   : > { %s1300_s17 = scalar_lea.hbm %s1299_s15, 64  ;;  %p1305_p3 = scmp.lt.s32.totalorder %s1299_s15, %s1719_s7 }
  0x55   : > { %p1301_p0 = scmp.ne.s32.totalorder %s1299_s15, %s1300_s17  ;;  %p1306_p4 = scmp.lt.s32.totalorder %s1304_s2, %s1300_s17 }
  0x57   : > { %p1302_p1 = pnand %p1301_p0, %p1449_p5  ;;  %p1307_p7 = por %p1306_p4, %p1305_p3 }
  0x59   : > { %p1303_p2 = pneg %p1302_p1 }
  0x5b   : > { %p1308_p8 = pnand %p1307_p7, %p1303_p2 }
  0x86   : > { %v474_v11 = vpop.permute.xlu2 %473 }
  0x8e   : > { %v476_v16 = vpop.permute.xlu2 %475 }
  0x8f   : > { %v478_v19 = vsel %vm477_vm0, %v474_v11, %v476_v16  ;;  %v483_v20 = vsel %vm477_vm0, %v476_v16, %v474_v11 }
  0x90   : > { %v487_v23 = vunpack.c.l.bf16 %v478_v19  ;;  %v488_v24 = vunpack.c.l.bf16 %v483_v20  ;;  %v489_v25 = vunpack.c.h.bf16 %v478_v19  ;;  %v490_v26 = vunpack.c.h.bf16 %v483_v20 }
  0x91   : > { %v1554_v19 = vunpack.c.l.bf16 %v433_v49 }
  0x92   : > { %v493_v31 = vmul.f32 %v491_v21, %v487_v23  ;;  %v494_v32 = vmul.f32 %v492_v22, %v488_v24  ;;  %v495_v33 = vmul.f32 %v491_v21, %v489_v25  ;;  %v496_v34 = vmul.f32 %v492_v22, %v490_v26 }
  0x93   : > { %v404_v22 = vperm.slane %v1524_v14, 0  ;;  %v408_v25 = vperm.slane %v1526_v15, 0  ;;  %v564_v26 = vunpack.c.l.b16 %v333_v12 }
  0x94   : > { %v1540_v41 = vpack.c.bf16 %v494_v32, %v493_v31  ;;  %v1542_v42 = vpack.c.bf16 %v496_v34, %v495_v33  ;;  %v565_v34 = vunpack.c.h.b16 %v333_v12 }
  0x96   : > { %v632_v53 = vunpack.c.l.b16 %v1540_v41  ;;  %v634_v54 = vunpack.c.l.b16 %v1542_v42  ;;  %v633_v55 = vunpack.c.h.b16 %v1540_v41  ;;  %v635_v56 = vunpack.c.h.b16 %v1542_v42  ;;  %v422_v11 = vpop.permute.xlu2 %421 }
  0x9d   : > { %v500_v29 = vpop.permute.xlu1 %499  ;;  %v526_v30 = vpop.permute.xlu0 %525 }
  0xa5   : > { %v502_v51 = vpop.permute.xlu1 %501  ;;  %v528_v52 = vpop.permute.xlu0 %527 }
  0xa6   : > { %v504_v57 = vsel %vm503_vm1, %v500_v29, %v502_v51  ;;  %v509_v58 = vsel %vm503_vm1, %v502_v51, %v500_v29  ;;  %v530_v59 = vsel %vm529_vm2, %v526_v30, %v528_v52  ;;  %v535_v60 = vsel %vm529_vm2, %v528_v52, %v526_v30 }
  0xa7   : > { %v513_v61 = vunpack.c.l.bf16 %v504_v57  ;;  %v514_v62 = vunpack.c.l.bf16 %v509_v58  ;;  %v515_v63 = vunpack.c.h.bf16 %v504_v57  ;;  %v516_v0 = vunpack.c.h.bf16 %v509_v58 }
  0xa8   : > { %v539_v1 = vunpack.c.l.bf16 %v530_v59  ;;  %v540_v3 = vunpack.c.l.bf16 %v535_v60  ;;  %v541_v4 = vunpack.c.h.bf16 %v530_v59  ;;  %v542_v6 = vunpack.c.h.bf16 %v535_v60  ;;  %v392_v60 = vpop.permute.xlu2 %391 }
  0xa9   : > { %v519_v7 = vmul.f32 %v517_v43, %v513_v61  ;;  %v520_v8 = vmul.f32 %v518_v44, %v514_v62  ;;  %v521_v9 = vmul.f32 %v517_v43, %v515_v63  ;;  %v522_v10 = vmul.f32 %v518_v44, %v516_v0 }
  0xaa   : > { %v545_v13 = vmul.f32 %v543_v45, %v539_v1  ;;  %v546_v16 = vmul.f32 %v544_v46, %v540_v3  ;;  %v547_v17 = vmul.f32 %v543_v45, %v541_v4  ;;  %v548_v18 = vmul.f32 %v544_v46, %v542_v6 }
  0xab   : > { %v523_v20 = vpack.c.bf16 %v520_v8, %v519_v7  ;;  %v524_v21 = vpack.c.bf16 %v522_v10, %v521_v9  ;;  %v440_v57 = vunpack.c.l.bf16 %v434_v50  ;;  %v636_v58 = vpack.c.b16 %v634_v54, %v632_v53 }
  0xac   : > { %v549_v23 = vpack.c.bf16 %v546_v16, %v545_v13  ;;  %v550_v24 = vpack.c.bf16 %v548_v18, %v547_v17  ;;  %v637_v59 = vpack.c.b16 %v635_v56, %v633_v55  ;;  %v413_v61 = vunpack.c.l.bf16 %v404_v22 }
  0xad   : > { %v450_v29 = vpop.permute.xlu1 %449  ;;  %v448_v30 = vpop.permute.xlu0 %447  ;;  %v642_v31 = vunpack.c.l.b16 %v523_v20  ;;  %v644_v32 = vunpack.c.l.b16 %v524_v21  ;;  %v643_v33 = vunpack.c.h.b16 %v523_v20  ;;  %v645_v44 = vunpack.c.h.b16 %v524_v21 }
  0xae   : > { %v452_v35 = vsel %vm451_vm3, %v450_v29, %v448_v30  ;;  %v457_v36 = vsel %vm451_vm3, %v448_v30, %v450_v29  ;;  %v652_v37 = vunpack.c.l.b16 %v549_v23  ;;  %v654_v38 = vunpack.c.l.b16 %v550_v24 }
  0xaf   : > { %v461_v39 = vunpack.c.l.bf16 %v457_v36  ;;  %v462_v40 = vunpack.c.l.bf16 %v452_v35  ;;  %v463_v14 = vunpack.c.h.bf16 %v457_v36  ;;  %v464_v41 = vunpack.c.h.bf16 %v452_v35 }
  0xb0   : > { %v656_v42 = vpack.c.b16 %v654_v38, %v652_v37  ;;  %v653_v43 = vunpack.c.h.b16 %v549_v23  ;;  %v655_v15 = vunpack.c.h.b16 %v550_v24  ;;  %v414_v62 = vunpack.c.l.bf16 %v408_v25 }
  0xb1   : > { %v467_v45 = vmul.f32 %v465_v47, %v461_v39  ;;  %v468_v46 = vmul.f32 %v466_v48, %v462_v40  ;;  %v469_v49 = vmul.f32 %v465_v47, %v463_v14  ;;  %v470_v51 = vmul.f32 %v466_v48, %v464_v41 }
  0xb2   : > { %694 = vmatpush.bf16.msra.mxu0 %v656_v42  ;;  %v657_v52 = vpack.c.b16 %v655_v15, %v653_v43  ;;  %v646_v63 = vpack.c.b16 %v644_v32, %v642_v31  ;;  %v372_v0 = vperm.slane %v1530_v27, 0  ;;  %v376_v1 = vperm.slane %v1532_v28, 0 }
  0xb3   : > { %v566_v3 = vpack.c.b16 %v564_v26, %v564_v26  ;;  %v647_v48 = vpack.c.b16 %v645_v44, %v643_v33  ;;  %v471_v6 = vpack.c.bf16 %v468_v46, %v467_v45  ;;  %v472_v7 = vpack.c.bf16 %v470_v51, %v469_v49 }
  0xb4   : > { %732 = vmatpush.bf16.msra.mxu2 %v657_v52  ;;  %v567_v50 = vpack.c.b16 %v565_v34, %v565_v34  ;;  %v381_v37 = vunpack.c.l.bf16 %v372_v0  ;;  %v382_v38 = vunpack.c.l.bf16 %v376_v1  ;;  %v552_v0 = vpop.permute.xlu2 %551 }
  0xb5   : > { %v390_v4 = vpop.permute.xlu1 %389  ;;  %v424_v47 = vpop.permute.xlu0 %423  ;;  %v569_v25 = vpack.i.b16 %v566_v3, %v566_v3  ;;  %v620_v31 = vunpack.c.l.b16 %v471_v6  ;;  %v622_v32 = vunpack.c.l.b16 %v472_v7  ;;  %v621_v33 = vunpack.c.h.b16 %v471_v6 }
  0xb6   : > { %v426_v53 = vsel %vm425_vm4, %v424_v47, %v422_v11  ;;  %v431_v54 = vsel %vm425_vm4, %v422_v11, %v424_v47  ;;  %695 = vmatpush.bf16.msra.mxu0 %v646_v63  ;;  %v394_v55 = vsel %vm393_vm5, %v392_v60, %v390_v4  ;;  %v399_v56 = vsel %vm393_vm5, %v390_v4, %v392_v60 }
  0xb7   : > { %v435_v8 = vunpack.c.l.bf16 %v431_v54  ;;  %v436_v27 = vunpack.c.l.bf16 %v426_v53  ;;  %v437_v9 = vunpack.c.h.bf16 %v431_v54  ;;  %v438_v28 = vunpack.c.h.bf16 %v426_v53 }
  0xb8   : > { %733 = vmatpush.bf16.msra.mxu2 %v647_v48  ;;  %v409_v10 = vunpack.c.l.bf16 %v399_v56  ;;  %v410_v12 = vunpack.c.l.bf16 %v394_v55  ;;  %v411_v13 = vunpack.c.h.bf16 %v399_v56  ;;  %v412_v16 = vunpack.c.h.bf16 %v394_v55 }
  0xb9   : > { %v441_v17 = vmul.f32 %v1554_v19, %v435_v8  ;;  %v442_v18 = vmul.f32 %v440_v57, %v436_v27  ;;  %v443_v20 = vmul.f32 %v1554_v19, %v437_v9  ;;  %v444_v11 = vmul.f32 %v440_v57, %v438_v28 }
  0xba   : > { %696 = vmatpush.bf16.msra.mxu0 %v636_v58  ;;  %v415_v21 = vmul.f32 %v413_v61, %v409_v10  ;;  %v416_v22 = vmul.f32 %v414_v62, %v410_v12  ;;  %v417_v23 = vmul.f32 %v413_v61, %v411_v13  ;;  %v418_v24 = vmul.f32 %v414_v62, %v412_v16 }
  0xbb   : > { %v573_v26 = vpack.i.b16 %v567_v50, %v567_v50  ;;  %v445_v29 = vpack.c.bf16 %v442_v18, %v441_v17  ;;  %v446_v30 = vpack.c.bf16 %v444_v11, %v443_v20  ;;  %v623_v34 = vunpack.c.h.b16 %v472_v7 }
  0xbc   : > { %734 = vmatpush.bf16.msra.mxu2 %v637_v59  ;;  %v419_v19 = vpack.c.bf16 %v416_v22, %v415_v21  ;;  %v420_v39 = vpack.c.bf16 %v418_v24, %v417_v23  ;;  %v624_v46 = vpack.c.b16 %v622_v32, %v620_v31  ;;  %v571_v51 = vperm.slane %v569_v25, 0  ;;  %v1070_v24 = vld [vmem:[%s1713_s1] sm:$0xf]  ;;  %v1095_v25 = vld [vmem:[%s1713_s1 + $0x4] sm:$0xf0] }
  0xbd   : > { %v355_v35 = vpop.permute.xlu1 %354  ;;  %v350_v36 = vpop.permute.xlu0 %349  ;;  %v610_v41 = vunpack.c.l.b16 %v445_v29  ;;  %v612_v42 = vunpack.c.l.b16 %v446_v30  ;;  %v625_v49 = vpack.c.b16 %v623_v34, %v621_v33  ;;  %v575_v52 = vperm.slane %v573_v26, 0  ;;  %v1094_v32 = vld [vmem:[%s1713_s1 + $0x4] sm:$0xf]  ;;  %v1072_v33 = vld [vmem:[%s1713_s1 + $0x8] sm:$0xf0] }
  0xbe   : > { %v357_v40 = vsel %vm356_vm6, %v355_v35, %v350_v36  ;;  %v362_v14 = vsel %vm356_vm6, %v350_v36, %v355_v35  ;;  %697 = vmatpush.bf16.msra.mxu0 %v1502_v2  ;;  %v611_v61 = vunpack.c.h.b16 %v445_v29  ;;  %v613_v62 = vunpack.c.h.b16 %v446_v30 }
  0xbf   : > { %v377_v43 = vunpack.c.l.bf16 %v362_v14  ;;  %v378_v15 = vunpack.c.l.bf16 %v357_v40  ;;  %v379_v44 = vunpack.c.h.bf16 %v362_v14  ;;  %v380_v45 = vunpack.c.h.bf16 %v357_v40  ;;  %v1096_v40 = vld [vmem:[%s1713_s1 + $0x14] sm:$0xf]  ;;  %v1080_v14 = vld [vmem:[%s1713_s1 + $0x18] sm:$0xf0] }
  0xc0   : > { %735 = vmatpush.bf16.msra.mxu2 %v1507_v5  ;;  %v600_v2 = vunpack.c.l.b16 %v419_v19  ;;  %v602_v63 = vunpack.c.l.b16 %v420_v39  ;;  %v614_v1 = vpack.c.b16 %v612_v42, %v610_v41  ;;  %v601_v3 = vunpack.c.h.b16 %v419_v19  ;;  %v1078_v19 = vld [vmem:[%s1713_s1 + $0x10] sm:$0xf] }
  0xc1   : > { %v383_v57 = vmul.f32 %v381_v37, %v377_v43  ;;  %v384_v58 = vmul.f32 %v382_v38, %v378_v15  ;;  %v385_v59 = vmul.f32 %v381_v37, %v379_v44  ;;  %v386_v60 = vmul.f32 %v382_v38, %v380_v45 }
  0xc2   : > { %698 = vmatpush.bf16.msra.mxu0 %v624_v46  ;;  %v603_v4 = vunpack.c.h.b16 %v420_v39  ;;  %v580_v6 = vunpack.c.l.bf16 %v571_v51  ;;  %v581_v7 = vunpack.c.l.bf16 %v575_v52  ;;  %v615_v54 = vpack.c.b16 %v613_v62, %v611_v61  ;;  %v1097_v39 = vld [vmem:[%s1713_s1 + $0x14] sm:$0xf0] }
  0xc3   : > { %v387_v5 = vpack.c.bf16 %v384_v58, %v383_v57  ;;  %v388_v47 = vpack.c.bf16 %v386_v60, %v385_v59  ;;  %v604_v55 = vpack.c.b16 %v602_v63, %v600_v2  ;;  %v1071_v35 = vor.u32 %v1095_v25, %v1070_v24 }
  0xc4   : > { %736 = vmatpush.bf16.msra.mxu2 %v625_v49  ;;  %v605_v28 = vpack.c.b16 %v603_v4, %v601_v3  ;;  %v1075_v38 = vor.u32 %v1094_v32, %v1072_v33  ;;  %v1079_v41 = vor.u32 %v1097_v39, %v1078_v19  ;;  %v1083_v42 = vor.u32 %v1096_v40, %v1080_v14 }
  0xc5   : > { %v554_v48 = vpop.permute.xlu0 %553  ;;  %v590_v10 = vunpack.c.l.b16 %v387_v5  ;;  %v592_v12 = vunpack.c.l.b16 %v388_v47  ;;  %v591_v20 = vunpack.c.h.b16 %v387_v5  ;;  %v593_v11 = vunpack.c.h.b16 %v388_v47 }
  0xc6   : > { %v556_v50 = vsel %vm555_vm7, %v552_v0, %v554_v48  ;;  %v561_v53 = vsel %vm555_vm7, %v554_v48, %v552_v0  ;;  %699 = vmatpush.bf16.msra.mxu0 %v614_v1 }
  0xc7   : > { %v576_v56 = vunpack.c.l.bf16 %v556_v50  ;;  %v577_v8 = vunpack.c.l.bf16 %v561_v53  ;;  %v578_v27 = vunpack.c.h.bf16 %v556_v50  ;;  %v579_v9 = vunpack.c.h.bf16 %v561_v53 }
  0xc8   : > { %737 = vmatpush.bf16.msra.mxu2 %v615_v54  ;;  %v594_v23 = vpack.c.b16 %v592_v12, %v590_v10  ;;  %v595_v34 = vpack.c.b16 %v593_v11, %v591_v20 }
  0xc9   : > { %v582_v13 = vmul.f32 %v580_v6, %v576_v56  ;;  %v583_v16 = vmul.f32 %v581_v7, %v577_v8  ;;  %v584_v17 = vmul.f32 %v580_v6, %v578_v27  ;;  %v585_v18 = vmul.f32 %v581_v7, %v579_v9 }
  0xca   : > { %700 = vmatpush.bf16.msra.mxu0 %v604_v55 }
  0xcb   : > { %v586_v21 = vpack.c.bf16 %v583_v16, %v582_v13  ;;  %v587_v22 = vpack.c.bf16 %v585_v18, %v584_v17 }
  0xcc   : > { %738 = vmatpush.bf16.msra.mxu2 %v605_v28 }
  0xcd   : > { %v662_v26 = vunpack.c.l.b16 %v586_v21  ;;  %v664_v29 = vunpack.c.l.b16 %v587_v22  ;;  %v663_v30 = vunpack.c.h.b16 %v586_v21  ;;  %v665_v31 = vunpack.c.h.b16 %v587_v22 }
  0xce   : > { %701 = vmatpush.bf16.msra.mxu0 %v594_v23 }
  0xcf   : > { %v666_v36 = vpack.c.b16 %v664_v29, %v662_v26  ;;  %v667_v37 = vpack.c.b16 %v665_v31, %v663_v30 }
  0xd0   : > { %739 = vmatpush.bf16.msra.mxu2 %v595_v34 }
  0xd1   : > { %720 = vmatpush.bf16.msra.mxu1 %v666_v36  ;;  %758 = vmatpush.bf16.msra.mxu3 %v667_v37  ;;  %v1369_v37 = vmov 0  }
  0xd2   : > { %702 = vmatmul.bf16.vlgmr.msra.gmra.mxu0 %v1071_v35  ;;  %1185 = vset.pattern.permute.xlu1 %v1369_v37 }
  0xd3   : > { %740 = vmatmul.bf16.vlgmr.msra.gmra.mxu2 %v1071_v35  ;;  %1183 = vset.pattern.permute.xlu2 %v1369_v37 }
  0xd4   : > { %1084 = vmatmul.msk.bf16.vlgmr.msra.gmra.mxu1 %vm393_vm5, %v1075_v38  ;;  %1086 = vmatmul.msk.bf16.vlgmr.msra.gmra.mxu3 %vm393_vm5, %v1075_v38  ;;  %v338_v38 = vld [vmem:[%s1718_s6] sm:$0xff] }
  0xd5   : > { %1184 = vset.pattern.permute.xlu0 %v1369_v37 }
  0xe2   : > { %707 = vmatmul.bf16.gmra.mxu0 %v1079_v41 }
  0xe3   : > { %745 = vmatmul.bf16.gmra.mxu2 %v1079_v41 }
  0xe4   : > { %1085 = vmatmul.msk.bf16.gmra.mxu1 %vm393_vm5, %v1083_v42  ;;  %1087 = vmatmul.msk.bf16.gmra.mxu3 %vm393_vm5, %v1083_v42 }
 0x14f   : > { %v703_v43 = vpop.f32.mrf.mxu0 }
 0x151   : > { %v722_v15 = vpop.f32.mrf.mxu1 }
 0x152   : > { %v723_v44 = vadd.f32 %v722_v15, %v703_v43 }
 0x156   : > { %v741_v45 = vpop.f32.mrf.mxu2 }
 0x157   : > { %v760_v46 = vpop.f32.mrf.mxu3  ;;  %v705_v52 = vpop.f32.mrf.mxu0 }
 0x158   : > { %v761_v49 = vadd.f32 %v760_v46, %v741_v45 }
 0x159   : > { %v724_v51 = vpop.f32.mrf.mxu1 }
 0x15a   : > { %v770_v57 = vadd.f32 %v761_v49, %v723_v44  ;;  %v725_v60 = vadd.f32 %v724_v51, %v705_v52 }
 0x15c   : > { %771 = vadd.xlane.f32.xlu1 %v770_v57 }
 0x15e   : > { %v743_v58 = vpop.f32.mrf.mxu2 }
 0x15f   : > { %v762_v59 = vpop.f32.mrf.mxu3  ;;  %v708_v63 = vpop.f32.mrf.mxu0 }
 0x160   : > { %v763_v61 = vadd.f32 %v762_v59, %v743_v58  ;;  %v334_v59 = vld [vmem:[%s1717_s5] sm:$0xff] }
 0x161   : > { %v727_v2 = vpop.f32.mrf.mxu1 }
 0x162   : > { %v773_v62 = vadd.f32 %v763_v61, %v725_v60  ;;  %v728_v0 = vadd.f32 %v727_v2, %v708_v63 }
 0x164   : > { %774 = vadd.xlane.f32.xlu2 %v773_v62 }
 0x166   : > { %v746_v1 = vpop.f32.mrf.mxu2 }
 0x167   : > { %v765_v3 = vpop.f32.mrf.mxu3  ;;  %v710_v48 = vpop.f32.mrf.mxu0 }
 0x168   : > { %v766_v4 = vadd.f32 %v765_v3, %v746_v1 }
 0x169   : > { %v729_v47 = vpop.f32.mrf.mxu1 }
 0x16a   : > { %v776_v5 = vadd.f32 %v766_v4, %v728_v0  ;;  %v730_v50 = vadd.f32 %v729_v47, %v710_v48  ;;  %v335_v48 = vld [vmem:[%s1717_s5 + $0x8] sm:$0xff] }
 0x16c   : > { %777 = vadd.xlane.f32.xlu0 %v776_v5 }
 0x16e   : > { %v748_v6 = vpop.f32.mrf.mxu2 }
 0x16f   : > { %v767_v7 = vpop.f32.mrf.mxu3 }
 0x170   : > { %v768_v53 = vadd.f32 %v767_v7, %v748_v6 }
 0x172   : > { %v779_v54 = vadd.f32 %v768_v53, %v730_v50 }
 0x174   : > { %780 = vadd.xlane.f32.xlu2 %v779_v54 }
 0x1cf   : > { %v772_v55 = vpop.xlane.xlu1 %771 }
 0x1d0   : > { %v782_v56 = vmul.f32 0.00390625, %v772_v55 }
 0x1d2   : > { %v1600_v8 = vsub.f32 %v723_v44, %v782_v56  ;;  %v1602_v27 = vsub.f32 %v761_v49, %v782_v56 }
 0x1d4   : > { %v794_v9 = vmul.f32 %v1600_v8, %v1600_v8  ;;  %v795_v28 = vmul.f32 %v1602_v27, %v1602_v27 }
 0x1d6   : > { %v802_v10 = vadd.f32 %v795_v28, %v794_v9 }
 0x1d7   : > { %v775_v12 = vpop.xlane.xlu2 %774 }
 0x1d8   : > { %v783_v13 = vmul.f32 0.00390625, %v775_v12  ;;  %803 = vadd.xlane.f32.xlu1 %v802_v10  ;;  %v336_v10 = vld [vmem:[%s1717_s5 + $0x10] sm:$0xff] }
 0x1da   : > { %v1608_v16 = vsub.f32 %v725_v60, %v783_v13  ;;  %v1610_v17 = vsub.f32 %v763_v61, %v783_v13 }
 0x1dc   : > { %v796_v18 = vmul.f32 %v1608_v16, %v1608_v16  ;;  %v797_v20 = vmul.f32 %v1610_v17, %v1610_v17 }
 0x1de   : > { %v805_v11 = vadd.f32 %v797_v20, %v796_v18 }
 0x1df   : > { %v778_v21 = vpop.xlane.xlu0 %777 }
 0x1e0   : > { %v784_v22 = vmul.f32 0.00390625, %v778_v21  ;;  %806 = vadd.xlane.f32.xlu2 %v805_v11 }
 0x1e2   : > { %v1616_v23 = vsub.f32 %v728_v0, %v784_v22  ;;  %v1618_v24 = vsub.f32 %v766_v4, %v784_v22  ;;  %v337_v22 = vld [vmem:[%s1717_s5 + $0x18] sm:$0xff] }
 0x1e4   : > { %v798_v25 = vmul.f32 %v1616_v23, %v1616_v23  ;;  %v799_v26 = vmul.f32 %v1618_v24, %v1618_v24 }
 0x1e6   : > { %v808_v29 = vadd.f32 %v799_v26, %v798_v25  ;;  %v340_v26 = vld [vmem:[%s1718_s6 + $0x10] sm:$0xff] }
 0x1e7   : > { %v781_v30 = vpop.xlane.xlu2 %780 }
 0x1e8   : > { %v785_v31 = vmul.f32 0.00390625, %v781_v30  ;;  %809 = vadd.xlane.f32.xlu0 %v808_v29 }
 0x1ea   : > { %v1624_v32 = vsub.f32 %v730_v50, %v785_v31  ;;  %v1626_v33 = vsub.f32 %v768_v53, %v785_v31  ;;  %v339_v53 = vld [vmem:[%s1718_s6 + $0x8] sm:$0xff]  ;;  %v341_v31 = vld [vmem:[%s1718_s6 + $0x18] sm:$0xff] }
 0x1ec   : > { %v800_v34 = vmul.f32 %v1624_v32, %v1624_v32  ;;  %v801_v35 = vmul.f32 %v1626_v33, %v1626_v33 }
 0x1ee   : > { %v811_v36 = vadd.f32 %v801_v35, %v800_v34 }
 0x1f0   : > { %812 = vadd.xlane.f32.xlu1 %v811_v36 }
 0x209   : > { %896 = vperm.xlu1 %1185, %v338_v38  }
 0x24b   : > { %v804_v19 = vpop.xlane.xlu1 %803 }
 0x24c   : > { %v814_v39 = vmul.f32 0.00390625, %v804_v19 }
 0x24e   : > { %v818_v40 = vadd.f32 1e-05, %v814_v39 }
 0x250   : > { %1186 = vrsqrt.f32 %v818_v40  ;;  %vm828_vm9 = vweird.f32 %v818_v40 }
 0x253   : > { %v807_v14 = vpop.xlane.xlu2 %806 }
 0x254   : > { %v815_v41 = vmul.f32 0.00390625, %v807_v14 }
 0x256   : > { %v1187_v42 = vpop.eup %1186  ;;  %v819_v43 = vadd.f32 1e-05, %v815_v41 }
 0x257   : > { %v823_v15 = vmul.f32 %v1187_v42, %v818_v40  ;;  %vm829_vm8 = vweird.f32 %v1187_v42 }
 0x258   : > { %1188 = vrsqrt.f32 %v819_v43  ;;  %vm830_vm10 = vmor %vm828_vm9, %vm829_vm8  ;;  %vm838_vm12 = vweird.f32 %v819_v43 }
 0x259   : > { %v824_v44 = vmul.f32 %v1187_v42, %v823_v15 }
 0x25b   : > { %v825_v45 = vmul.f32 0.5, %v824_v44  ;;  %v810_v46 = vpop.xlane.xlu0 %809 }
 0x25c   : > { %v816_v49 = vmul.f32 0.00390625, %v810_v46 }
 0x25d   : > { %v826_v51 = vsub.f32 1.5, %v825_v45 }
 0x25e   : > { %v1189_v52 = vpop.eup %1188  ;;  %v820_v57 = vadd.f32 1e-05, %v816_v49 }
 0x25f   : > { %v833_v58 = vmul.f32 %v1189_v52, %v819_v43  ;;  %v827_v60 = vmul.f32 %v1187_v42, %v826_v51  ;;  %vm839_vm11 = vweird.f32 %v1189_v52 }
 0x260   : > { %1190 = vrsqrt.f32 %v820_v57  ;;  %vm840_vm13 = vmor %vm838_vm12, %vm839_vm11  ;;  %vm848_vm15 = vweird.f32 %v820_v57 }
 0x261   : > { %v834_v61 = vmul.f32 %v1189_v52, %v833_v58  ;;  %v831_v62 = vsel %vm830_vm10, %v1187_v42, %v827_v60 }
 0x262   : > { %v862_v2 = vmul.f32 %v831_v62, %v334_v59 }
 0x263   : > { %v835_v63 = vmul.f32 0.5, %v834_v61  ;;  %v813_v0 = vpop.xlane.xlu1 %812 }
 0x264   : > { %v817_v1 = vmul.f32 0.00390625, %v813_v0  ;;  %868 = vperm.xlu2 %1183, %v862_v2  }
 0x265   : > { %v836_v3 = vsub.f32 1.5, %v835_v63 }
 0x266   : > { %v1191_v4 = vpop.eup %1190  ;;  %v821_v5 = vadd.f32 1e-05, %v817_v1 }
 0x267   : > { %v843_v47 = vmul.f32 %v1191_v4, %v820_v57  ;;  %v837_v6 = vmul.f32 %v1189_v52, %v836_v3  ;;  %vm849_vm14 = vweird.f32 %v1191_v4 }
 0x268   : > { %1192 = vrsqrt.f32 %v821_v5  ;;  %vm850_vm0 = vmor %vm848_vm15, %vm849_vm14  ;;  %vm858_vm2 = vweird.f32 %v821_v5 }
 0x269   : > { %v844_v7 = vmul.f32 %v1191_v4, %v843_v47  ;;  %v841_v50 = vsel %vm840_vm13, %v1189_v52, %v837_v6 }
 0x26a   : > { %v863_v54 = vmul.f32 %v841_v50, %v335_v48 }
 0x26b   : > { %v845_v55 = vmul.f32 0.5, %v844_v7 }
 0x26c   : > { %873 = vperm.xlu0 %1184, %v863_v54   ;;  %901 = vperm.xlu2 %1183, %v339_v53  }
 0x26d   : > { %v846_v56 = vsub.f32 1.5, %v845_v55 }
 0x26e   : > { %v1193_v9 = vpop.eup %1192 }
 0x26f   : > { %v853_v28 = vmul.f32 %v1193_v9, %v821_v5  ;;  %v847_v12 = vmul.f32 %v1191_v4, %v846_v56  ;;  %vm859_vm1 = vweird.f32 %v1193_v9 }
 0x270   : > { %vm860_vm3 = vmor %vm858_vm2, %vm859_vm1 }
 0x271   : > { %v854_v13 = vmul.f32 %v1193_v9, %v853_v28  ;;  %v851_v18 = vsel %vm850_vm0, %v1191_v4, %v847_v12 }
 0x272   : > { %v864_v20 = vmul.f32 %v851_v18, %v336_v10 }
 0x273   : > { %v855_v11 = vmul.f32 0.5, %v854_v13 }
 0x274   : > { %878 = vperm.xlu1 %1185, %v864_v20  }
 0x275   : > { %v856_v21 = vsub.f32 1.5, %v855_v11 }
 0x277   : > { %v857_v25 = vmul.f32 %v1193_v9, %v856_v21 }
 0x279   : > { %v861_v29 = vsel %vm860_vm3, %v1193_v9, %v857_v25 }
 0x27a   : > { %v865_v30 = vmul.f32 %v861_v29, %v337_v22 }
 0x27b   : > { %v897_v35 = vpop.permute.xlu1 %896 }
 0x27c   : > { %906 = vperm.xlu1 %1185, %v340_v26   ;;  %883 = vperm.xlu2 %1183, %v865_v30  }
 0x284   : > { %911 = vperm.xlu2 %1183, %v341_v31  }
 0x2be   : > { %v869_v34 = vpop.permute.xlu2 %868 }
 0x2bf   : > { %v886_v36 = vmul.f32 %v869_v34, %v1600_v8  ;;  %v887_v37 = vmul.f32 %v869_v34, %v1602_v27 }
 0x2c1   : > { %v914_v38 = vadd.f32 %v897_v35, %v886_v36  ;;  %v915_v19 = vadd.f32 %v897_v35, %v887_v37 }
 0x2c3   : > { %v922_v39 = vmax.f32 %v914_v38, 0.0  ;;  %v923_v40 = vmax.f32 %v915_v19, 0.0 }
 0x2c5   : > { %930 = vst [vmem:[%s1661_s20] sm:$0xff] %v922_v39 }
 0x2c6   : > { %931 = vst [vmem:[%s1661_s20 + $0x8] sm:$0xff] %v923_v40  ;;  %v902_v14 = vpop.permute.xlu2 %901 }
 0x2d6   : > { %v884_v41 = vpop.permute.xlu2 %883 }
 0x2d7   : > { %v892_v8 = vmul.f32 %v884_v41, %v1624_v32  ;;  %v893_v27 = vmul.f32 %v884_v41, %v1626_v33 }
 0x2de   : > { %v874_v42 = vpop.permute.xlu0 %873  ;;  %v912_v43 = vpop.permute.xlu2 %911 }
 0x2df   : > { %v888_v15 = vmul.f32 %v874_v42, %v1608_v16  ;;  %v889_v44 = vmul.f32 %v874_v42, %v1610_v17  ;;  %v920_v45 = vadd.f32 %v912_v43, %v892_v8  ;;  %v921_v46 = vadd.f32 %v912_v43, %v893_v27 }
 0x2e1   : > { %v916_v49 = vadd.f32 %v902_v14, %v888_v15  ;;  %v917_v51 = vadd.f32 %v902_v14, %v889_v44  ;;  %v928_v52 = vmax.f32 %v920_v45, 0.0  ;;  %v929_v57 = vmax.f32 %v921_v46, 0.0 }
 0x2e3   : > { %v924_v58 = vmax.f32 %v916_v49, 0.0  ;;  %v925_v32 = vmax.f32 %v917_v51, 0.0  ;;  %936 = vst [vmem:[%s1661_s20 + $0x30] sm:$0xff] %v928_v52 }
 0x2e4   : > { %937 = vst [vmem:[%s1661_s20 + $0x38] sm:$0xff] %v929_v57 }
 0x2e5   : > { %932 = vst [vmem:[%s1661_s20 + $0x10] sm:$0xff] %v924_v58 }
 0x2e6   : > { %933 = vst [vmem:[%s1661_s20 + $0x18] sm:$0xff] %v925_v32  ;;  %v879_v33 = vpop.permute.xlu1 %878 }
 0x2e7   : > { %v890_v16 = vmul.f32 %v879_v33, %v1616_v23  ;;  %v891_v17 = vmul.f32 %v879_v33, %v1618_v24 }
 0x2ee   : > { %v907_v59 = vpop.permute.xlu1 %906 }
 0x2ef   : > { %v918_v60 = vadd.f32 %v907_v59, %v890_v16  ;;  %v919_v61 = vadd.f32 %v907_v59, %v891_v17 }
 0x2f1   : > { %v926_v62 = vmax.f32 %v918_v60, 0.0  ;;  %v927_v2 = vmax.f32 %v919_v61, 0.0 }
 0x2f3   : > { %934 = vst [vmem:[%s1661_s20 + $0x20] sm:$0xff] %v926_v62 }
 0x2f4   : > { %935 = vst [vmem:[%s1661_s20 + $0x28] sm:$0xff] %v927_v2 }
 0x2f5   : > { %1311 = shalt.err (!%p1308_p8)
}
 0x2f6   : > { %s1370_s19 = smov 256  }
 0x2f7   : > { %1113 = dma.vmem_to_hbm [thread:$0]  (%p1449_p5), %s952_s8, 1024, %s954_s14, %s939_s28, %s1370_s19, %s1370_s19, %s1366_s9  }
 0x2f8 PF: > { %p1135_p9 = scmp.ge.s32.totalorder %s1354_s27, 2  ;;  %s968_s20 = sand.u32 1, %s1342_s24  }
 0x2f9   : > { %s969_s22 = scalar_lea.sflag [#allocation4], %s968_s20 }
 0x2fa   : > { %p1126_p10 = pnand %p1135_p9, %p1453_p6 }
 0x2fc   : > { %p1127_p11 = pneg %p1126_p10 }
 0x2fe   : > { %1337 = dma.done.wait (%p1127_p11), %s969_s22, 1024  }
 0x2ff   : > { %1339 = vsyncadd (%p1127_p11), %s969_s22, 4294966272  ;;  %p19_p12 = scmp.ge.s32.totalorder %s1436_s30, 4   ;;  %s1726_s24 = smov %s1346_s25 }
 0x300   : > { %s1727_s25 = smov %s1350_s26  ;;  %s1728_s26 = smov %s1447_s10 }
 0x301   : > { %s1729_s27 = smov %s1436_s30  ;;  %21 = sbr.rel (!%p19_p12) target bundleno = 7 (0x7), region = 96 }
 0x306   :  { %975 = vsyncpa [#allocation3], 1 }
 0x307   :  { %977 = vsyncpa [#allocation3 + $0x1], 1 }
 0x308   :  { %978 = vsyncpa [#allocation6], 1 }
 0x309   :  { %979 = vsyncpa [#allocation4], 1 }
 0x30a   :  { %981 = vsyncpa [#allocation4 + $0x1], 1 }

</bundles_post_ra>
